<compile_context>
chip_gen: v7x
topology: tpu7x:2x2x1
jax: 0.10.0
libtpu: 0.0.40
codegen_flags: <defaults>
</compile_context>

<pallas_src>
import jax
import jax.numpy as jnp
from jax.experimental import pallas as pl
from jax.experimental.pallas import tpu as pltpu


_NEG_PAD = -1e9            # pad logit: BCE(x=-1e9, t=0) == 0 exactly in f32
_LANES = 1024              # lane width of the packed slab (multiple of 128)
_CHUNK_ROWS = 16           # entry-alignment quantum: one bf16 native tile of rows
_CHUNK_ELEMS = _CHUNK_ROWS * _LANES      # 16384 elements
_MAX_CHUNKS_PER_BLOCK = 16               # block <= (256, 1024): 1 MiB f32 / 0.5 MiB bf16
_NSHARD = 2                # leading "parallel" axis -> both TensorCores on v7x


def _round_up(a, b):
    return ((a + b - 1) // b) * b


def _cdiv(a, b):
    return -(-a // b)


# ----------------------------- kernel ----------------------------------------

def _bce_kernel(eid_ref, x_ref, t_ref, out_ref):
    """Accumulate per-entry BCE-with-logits sums for one (sub_blk, 1024) block."""
    s = pl.program_id(0)          # shard (parallel)
    j = pl.program_id(1)          # pixel-block within shard (reduction)

    # Per-shard (n, 8, 128) accumulator stays resident in VMEM across the whole
    # reduction axis; zero it once per shard.
    @pl.when(j == 0)
    def _init():
        out_ref[...] = jnp.zeros_like(out_ref)

    n_chunks = x_ref.shape[0] // _CHUNK_ROWS       # 16-row chunks in this block
    n_folds = x_ref.shape[1] // 128
    base = (s * pl.num_programs(1) + j) * n_chunks  # global id of this block's chunk 0

    for c in range(n_chunks):
        row0 = c * _CHUNK_ROWS
        # Natural 16-row loads (one bf16 tile / two f32 tiles); upcast once.
        x16 = x_ref[row0:row0 + _CHUNK_ROWS, :].astype(jnp.float32)
        t16 = t_ref[row0:row0 + _CHUNK_ROWS, :].astype(jnp.float32)

        # Compute BCE in two 8-row halves to bound live vregs; fold lanes down to a
        # 128-wide column with static, vreg-aligned slices (pure VALU adds).
        part = jnp.zeros((8, 128), jnp.float32)
        for h in range(2):
            x = x16[h * 8:(h + 1) * 8, :]
            t = t16[h * 8:(h + 1) * 8, :]
            # Numerically stable BCE-with-logits (same form PyTorch uses).
            bce = jnp.maximum(x, 0.0) - x * t + jnp.log1p(jnp.exp(-jnp.abs(x)))
            acc = bce[:, 0:128]
            for k in range(1, n_folds):
                acc = acc + bce[:, k * 128:(k + 1) * 128]
            part = part + acc

        # Add this chunk's partial into its entry's accumulator row.
        e = eid_ref[base + c]
        out_ref[e] = out_ref[e] + part


# ----------------------------- wrapper ----------------------------------------

def concat_bce_forward(dic_tmp, y, step=0):
    """Forward of Concat_BCEWithLogitsLoss with top_k_percent_pixels=None.

    dic_tmp: list of logits (B, 1, H, W); y: list of labels with matching shapes.
    Returns a (len(dic_tmp),) vector of per-entry mean BCE-with-logits losses
    (== torch.cat of the unsqueezed scalar losses). `step` is unused on this path.
    """
    # TODO(synk): the top_k_percent_pixels branch (torch.topk hard-example mining)
    # is not exercised by the default __init__ args and is not kernelized here.
    n = len(dic_tmp)
    if n == 0:
        return jnp.zeros((0,), jnp.float32)

    # Flatten (free reshape).  Logits keep their native dtype; labels are exactly
    # representable in bf16 ({0,1}), halving their HBM traffic.
    flat_x = [jnp.reshape(lg, (-1,)) for lg in dic_tmp]
    flat_t = [jnp.reshape(lb, (-1,)).astype(jnp.bfloat16) for lb in y]
    counts = [int(v.shape[0]) for v in flat_x]
    x_dtype = jnp.result_type(*[v.dtype for v in flat_x])

    # Dense packing: pad each entry only to the 16384-element chunk quantum and
    # concatenate (single pad+concat pass -- no full-slab scatter into jnp.full).
    xs_segs, ts_segs, chunk_eids = [], [], []
    for i in range(n):
        c = counts[i]
        nch = max(1, _cdiv(c, _CHUNK_ELEMS))
        pad = nch * _CHUNK_ELEMS - c
        xs_segs.append(jnp.pad(flat_x[i].astype(x_dtype), (0, pad),
                               constant_values=_NEG_PAD))
        ts_segs.append(jnp.pad(flat_t[i], (0, pad)))
        chunk_eids.extend([i] * nch)

    data_chunks = len(chunk_eids)
    # Chunks per block: as big as useful (<= 1 MiB f32 per input block) but never
    # more than one shard's worth of data.
    cpb = min(_MAX_CHUNKS_PER_BLOCK, max(1, _cdiv(data_chunks, _NSHARD)))
    sub_blk = cpb * _CHUNK_ROWS

    blocks = _round_up(_cdiv(data_chunks, cpb), _NSHARD)
    bps = blocks // _NSHARD                      # blocks per shard
    total_chunks = blocks * cpb
    extra = total_chunks - data_chunks
    if extra:                                    # pad chunks contribute exactly 0
        xs_segs.append(jnp.full((extra * _CHUNK_ELEMS,), _NEG_PAD, dtype=x_dtype))
        ts_segs.append(jnp.zeros((extra * _CHUNK_ELEMS,), dtype=jnp.bfloat16))
        chunk_eids.extend([0] * extra)

    xs = jnp.concatenate(xs_segs).reshape(blocks * sub_blk, _LANES)
    ts = jnp.concatenate(ts_segs).reshape(blocks * sub_blk, _LANES)
    eid_tbl = jnp.asarray(chunk_eids, dtype=jnp.int32)

    partial = pl.pallas_call(
        _bce_kernel,
        out_shape=jax.ShapeDtypeStruct((_NSHARD * n, 8, 128), jnp.float32),
        grid_spec=pltpu.PrefetchScalarGridSpec(
            num_scalar_prefetch=1,
            grid=(_NSHARD, bps),
            in_specs=[
                pl.BlockSpec((sub_blk, _LANES),
                             lambda s, j, eid: (s * bps + j, 0)),
                pl.BlockSpec((sub_blk, _LANES),
                             lambda s, j, eid: (s * bps + j, 0)),
            ],
            out_specs=pl.BlockSpec((n, 8, 128), lambda s, j, eid: (s, 0, 0)),
        ),
        compiler_params=pltpu.CompilerParams(
            # shard axis independent (both TCs on v7x); block axis is the reduction.
            dimension_semantics=("parallel", "arbitrary"),
            # 2 inputs x 2 pipeline buffers x (1 MiB f32 + 0.5 MiB bf16) + tiny
            # accumulator ~= 3.2 MiB: fits every generation's scoped-VMEM default;
            # 32 MiB keeps headroom and is safe even on v7x (64 MiB physical).
            vmem_limit_bytes=32 * 1024 * 1024,
        ),
    )(eid_tbl, xs, ts)

    # Tiny final reduction over (shard, 8 sublanes, 128 lanes); kept outside the
    # kernel because per-shard partials (dual-TC path) must be combined anyway.
    per_entry_sum = jnp.sum(partial.reshape(_NSHARD, n, 8, 128), axis=(0, 2, 3))
    return per_entry_sum / jnp.asarray(counts, dtype=jnp.float32)


# ----------------------------- pure-JAX reference -----------------------------

def _bce_mean_ref(logits, labels):
    x = logits.astype(jnp.float32)
    t = labels.astype(jnp.float32)
    loss = jnp.maximum(x, 0.0) - x * t + jnp.log1p(jnp.exp(-jnp.abs(x)))
    return jnp.mean(loss)


# ----------------------------- main -------------------------------------------

if __name__ == "__main__":
    key = jax.random.PRNGKey(0)
    # Two multi-scale entries (as the module's list inputs imply), B=2, C=1.
    shapes = [(2, 1, 16, 16), (2, 1, 8, 8)]

    dic_tmp, y = [], []
    for shp in shapes:
        key, k1, k2 = jax.random.split(key, 3)
        dic_tmp.append(jax.random.normal(k1, shp, dtype=jnp.float32))
        y.append(jax.random.bernoulli(k2, 0.4, shp).astype(jnp.float32))

    total_loss = concat_bce_forward(dic_tmp, y, step=100)
    total_loss = jax.block_until_ready(total_loss)

    ref = jnp.stack([_bce_mean_ref(l, g) for l, g in zip(dic_tmp, y)])
    assert total_loss.shape == (len(shapes),)
    assert jnp.allclose(total_loss, ref, atol=1e-5, rtol=1e-5), (total_loss, ref)

    print("KERNEL_OK")
</pallas_src>

<mosaic_0001>
module attributes {stable_mosaic.version = 11 : i64} {
  func.func @_bce_kernel(%arg0: i32, %arg1: i32, %arg2: memref<2xi32, #tpu.memory_space<smem>>, %arg3: memref<16x1024xf32, #tpu.memory_space<vmem>>, %arg4: memref<16x1024xbf16, #tpu.memory_space<vmem>>, %arg5: memref<2x8x128xf32, #tpu.memory_space<vmem>>) attributes {dimension_semantics = [#tpu.dimension_semantics<parallel>, #tpu.dimension_semantics<arbitrary>], iteration_bounds = array<i64: 2, 1>, scalar_prefetch = 1 : i64, scratch_operands = 0 : i64, tpu.core_type = #tpu.core_type<tc>, window_params = [{transform_indices = @transform_0, window_bounds = array<i64: 16, 1024>}, {transform_indices = @transform_1, window_bounds = array<i64: 16, 1024>}, {transform_indices = @transform_2, window_bounds = array<i64: 2, 8, 128>}]} {
    %c0_i32 = arith.constant 0 : i32
    %0 = arith.cmpi eq, %arg1, %c0_i32 : i32
    %1 = arith.extui %0 : i1 to i32
    %c0_i32_0 = arith.constant 0 : i32
    %2 = arith.cmpi ne, %1, %c0_i32_0 : i32
    scf.if %2 {
      %cst_14 = arith.constant 0.000000e+00 : f32
      %77 = vector.broadcast %cst_14 : f32 to vector<2x8x128xf32>
      %c0_15 = arith.constant 0 : index
      %c0_16 = arith.constant 0 : index
      %c0_17 = arith.constant 0 : index
      %78 = vector.load %arg5[%c0_15, %c0_16, %c0_17] : memref<2x8x128xf32, #tpu.memory_space<vmem>>, vector<2x8x128xf32>
      tpu.vector_store %arg5[%c0_15, %c0_16, %c0_17], %77 {strides = array<i32>} : memref<2x8x128xf32, #tpu.memory_space<vmem>>, vector<2x8x128xf32>,
    } else {
    }
    %c1_i32 = arith.constant 1 : i32
    %3 = arith.muli %arg0, %c1_i32 : i32
    %4 = arith.addi %3, %arg1 : i32
    %c1_i32_1 = arith.constant 1 : i32
    %5 = arith.muli %4, %c1_i32_1 : i32
    %c0 = arith.constant 0 : index
    %c0_2 = arith.constant 0 : index
    %6 = vector.load %arg3[%c0, %c0_2] : memref<16x1024xf32, #tpu.memory_space<vmem>>, vector<16x1024xf32>
    %c0_3 = arith.constant 0 : index
    %c0_4 = arith.constant 0 : index
    %7 = vector.load %arg4[%c0_3, %c0_4] : memref<16x1024xbf16, #tpu.memory_space<vmem>>, vector<16x1024xbf16>
    %8 = arith.extf %7 : vector<16x1024xbf16> to vector<16x1024xf32>
    %cst = arith.constant 0.000000e+00 : f32
    %9 = vector.broadcast %cst : f32 to vector<8x128xf32>
    %10 = vector.extract_strided_slice %6 {offsets = [0, 0], sizes = [8, 1024], strides = [1, 1]} : vector<16x1024xf32> to vector<8x1024xf32>
    %11 = vector.extract_strided_slice %8 {offsets = [0, 0], sizes = [8, 1024], strides = [1, 1]} : vector<16x1024xf32> to vector<8x1024xf32>
    %cst_5 = arith.constant 0.000000e+00 : f32
    %12 = vector.broadcast %cst_5 : f32 to vector<8x1024xf32>
    %13 = arith.maximumf %10, %12 : vector<8x1024xf32>
    %14 = arith.mulf %10, %11 : vector<8x1024xf32>
    %15 = arith.subf %13, %14 : vector<8x1024xf32>
    %16 = math.absf %10 : vector<8x1024xf32>
    %cst_6 = arith.constant 0.000000e+00 : f32
    %17 = vector.broadcast %cst_6 : f32 to vector<8x1024xf32>
    %18 = arith.subf %17, %16 : vector<8x1024xf32>
    %19 = math.exp %18 : vector<8x1024xf32>
    %20 = math.log1p %19 : vector<8x1024xf32>
    %21 = arith.addf %15, %20 : vector<8x1024xf32>
    %22 = vector.extract_strided_slice %21 {offsets = [0, 0], sizes = [8, 128], strides = [1, 1]} : vector<8x1024xf32> to vector<8x128xf32>
    %23 = vector.extract_strided_slice %21 {offsets = [0, 128], sizes = [8, 128], strides = [1, 1]} : vector<8x1024xf32> to vector<8x128xf32>
    %24 = arith.addf %22, %23 : vector<8x128xf32>
    %25 = vector.extract_strided_slice %21 {offsets = [0, 256], sizes = [8, 128], strides = [1, 1]} : vector<8x1024xf32> to vector<8x128xf32>
    %26 = arith.addf %24, %25 : vector<8x128xf32>
    %27 = vector.extract_strided_slice %21 {offsets = [0, 384], sizes = [8, 128], strides = [1, 1]} : vector<8x1024xf32> to vector<8x128xf32>
    %28 = arith.addf %26, %27 : vector<8x128xf32>
    %29 = vector.extract_strided_slice %21 {offsets = [0, 512], sizes = [8, 128], strides = [1, 1]} : vector<8x1024xf32> to vector<8x128xf32>
    %30 = arith.addf %28, %29 : vector<8x128xf32>
    %31 = vector.extract_strided_slice %21 {offsets = [0, 640], sizes = [8, 128], strides = [1, 1]} : vector<8x1024xf32> to vector<8x128xf32>
    %32 = arith.addf %30, %31 : vector<8x128xf32>
    %33 = vector.extract_strided_slice %21 {offsets = [0, 768], sizes = [8, 128], strides = [1, 1]} : vector<8x1024xf32> to vector<8x128xf32>
    %34 = arith.addf %32, %33 : vector<8x128xf32>
    %35 = vector.extract_strided_slice %21 {offsets = [0, 896], sizes = [8, 128], strides = [1, 1]} : vector<8x1024xf32> to vector<8x128xf32>
    %36 = arith.addf %34, %35 : vector<8x128xf32>
    %37 = arith.addf %9, %36 : vector<8x128xf32>
    %38 = vector.extract_strided_slice %6 {offsets = [8, 0], sizes = [8, 1024], strides = [1, 1]} : vector<16x1024xf32> to vector<8x1024xf32>
    %39 = vector.extract_strided_slice %8 {offsets = [8, 0], sizes = [8, 1024], strides = [1, 1]} : vector<16x1024xf32> to vector<8x1024xf32>
    %cst_7 = arith.constant 0.000000e+00 : f32
    %40 = vector.broadcast %cst_7 : f32 to vector<8x1024xf32>
    %41 = arith.maximumf %38, %40 : vector<8x1024xf32>
    %42 = arith.mulf %38, %39 : vector<8x1024xf32>
    %43 = arith.subf %41, %42 : vector<8x1024xf32>
    %44 = math.absf %38 : vector<8x1024xf32>
    %cst_8 = arith.constant 0.000000e+00 : f32
    %45 = vector.broadcast %cst_8 : f32 to vector<8x1024xf32>
    %46 = arith.subf %45, %44 : vector<8x1024xf32>
    %47 = math.exp %46 : vector<8x1024xf32>
    %48 = math.log1p %47 : vector<8x1024xf32>
    %49 = arith.addf %43, %48 : vector<8x1024xf32>
    %50 = vector.extract_strided_slice %49 {offsets = [0, 0], sizes = [8, 128], strides = [1, 1]} : vector<8x1024xf32> to vector<8x128xf32>
    %51 = vector.extract_strided_slice %49 {offsets = [0, 128], sizes = [8, 128], strides = [1, 1]} : vector<8x1024xf32> to vector<8x128xf32>
    %52 = arith.addf %50, %51 : vector<8x128xf32>
    %53 = vector.extract_strided_slice %49 {offsets = [0, 256], sizes = [8, 128], strides = [1, 1]} : vector<8x1024xf32> to vector<8x128xf32>
    %54 = arith.addf %52, %53 : vector<8x128xf32>
    %55 = vector.extract_strided_slice %49 {offsets = [0, 384], sizes = [8, 128], strides = [1, 1]} : vector<8x1024xf32> to vector<8x128xf32>
    %56 = arith.addf %54, %55 : vector<8x128xf32>
    %57 = vector.extract_strided_slice %49 {offsets = [0, 512], sizes = [8, 128], strides = [1, 1]} : vector<8x1024xf32> to vector<8x128xf32>
    %58 = arith.addf %56, %57 : vector<8x128xf32>
    %59 = vector.extract_strided_slice %49 {offsets = [0, 640], sizes = [8, 128], strides = [1, 1]} : vector<8x1024xf32> to vector<8x128xf32>
    %60 = arith.addf %58, %59 : vector<8x128xf32>
    %61 = vector.extract_strided_slice %49 {offsets = [0, 768], sizes = [8, 128], strides = [1, 1]} : vector<8x1024xf32> to vector<8x128xf32>
    %62 = arith.addf %60, %61 : vector<8x128xf32>
    %63 = vector.extract_strided_slice %49 {offsets = [0, 896], sizes = [8, 128], strides = [1, 1]} : vector<8x1024xf32> to vector<8x128xf32>
    %64 = arith.addf %62, %63 : vector<8x128xf32>
    %65 = arith.addf %37, %64 : vector<8x128xf32>
    %c0_i32_9 = arith.constant 0 : i32
    %66 = arith.addi %5, %c0_i32_9 : i32
    %67 = arith.index_cast %66 : i32 to index
    %68 = memref.load %arg2[%67] : memref<2xi32, #tpu.memory_space<smem>>
    %69 = arith.index_cast %68 : i32 to index
    %c0_10 = arith.constant 0 : index
    %c0_11 = arith.constant 0 : index
    %70 = vector.load %arg5[%69, %c0_10, %c0_11] : memref<2x8x128xf32, #tpu.memory_space<vmem>>, vector<1x8x128xf32>
    %71 = vector.shape_cast %70 : vector<1x8x128xf32> to vector<8x128xf32>
    %72 = arith.addf %71, %65 : vector<8x128xf32>
    %73 = arith.index_cast %68 : i32 to index
    %c0_12 = arith.constant 0 : index
    %c0_13 = arith.constant 0 : index
    %74 = vector.load %arg5[%73, %c0_12, %c0_13] : memref<2x8x128xf32, #tpu.memory_space<vmem>>, vector<1x8x128xf32>
    %75 = vector.shape_cast %74 : vector<1x8x128xf32> to vector<8x128xf32>
    %76 = vector.shape_cast %72 : vector<8x128xf32> to vector<1x8x128xf32>
    tpu.vector_store %arg5[%73, %c0_12, %c0_13], %76 {strides = array<i32>} : memref<2x8x128xf32, #tpu.memory_space<vmem>>, vector<1x8x128xf32>,
    return
  }
  func.func @transform_0(%arg0: i32, %arg1: i32, %arg2: memref<2xi32, #tpu.memory_space<smem>>) -> (i32, i32) {
    %c1_i32 = arith.constant 1 : i32
    %0 = arith.muli %arg0, %c1_i32 : i32
    %1 = arith.addi %0, %arg1 : i32
    %c0_i32 = arith.constant 0 : i32
    %c0_i32_0 = arith.constant 0 : i32
    return %1, %c0_i32 : i32, i32
  }
  func.func @transform_1(%arg0: i32, %arg1: i32, %arg2: memref<2xi32, #tpu.memory_space<smem>>) -> (i32, i32) {
    %c1_i32 = arith.constant 1 : i32
    %0 = arith.muli %arg0, %c1_i32 : i32
    %1 = arith.addi %0, %arg1 : i32
    %c0_i32 = arith.constant 0 : i32
    %c0_i32_0 = arith.constant 0 : i32
    return %1, %c0_i32 : i32, i32
  }
  func.func @transform_2(%arg0: i32, %arg1: i32, %arg2: memref<2xi32, #tpu.memory_space<smem>>) -> (i32, i32, i32) {
    %c0_i32 = arith.constant 0 : i32
    %c0_i32_0 = arith.constant 0 : i32
    %c0_i32_1 = arith.constant 0 : i32
    return %arg0, %c0_i32, %c0_i32_0 : i32, i32, i32
  }
}

</mosaic_0001>

<bundles_post_ra>
// kernel: tpu_custom_call.1
= control target key start
LH: loop header
LB: loop body
LE: loop exit
PB: predicated region body
PF: predicated region fallthrough
CT: control target
= control target key end

     0   :  { %s1677_s0 = inlined_call_operand.hbm [shape: s32[2], index: 0, kind: input, shape index: {}]   ;;  %s1678_s1 = inlined_call_operand.hbm [shape: f32[32,1024], index: 1, kind: input, shape index: {}]   ;;  %s1679_s2 = inlined_call_operand.hbm [shape: bf16[32,1024], index: 2, kind: input, shape index: {}]   ;;  %s1680_s3 = inlined_call_operand.hbm [shape: f32[4,8,128], index: 3, kind: output, shape index: {}]  }
   0x1   :  { %s861_s14 = scalar_lea.hbm %s1677_s0, 16 }
   0x2   :  { %p862_p0 = scmp.ne.s32.totalorder %s1677_s0, %s861_s14  ;;  %p865_p1 = scmp.lt.u32.totalorder %s861_s14, %s1677_s0 }
   0x4   :  { %p867_p2 = pnand %p865_p1, %p862_p0 }
   0x6   :  { %870 = shalt.err (!%p867_p2)  }
   0x7   :  { %s1021_s19 = smov [#allocation3]  }
   0x8   :  { %9 = dma.hbm_to_smem %s1677_s0, 16, %s1021_s19, [#allocation2] }
   0x9   :  { %983 = dma.done.wait [#allocation2], 16 }
   0xa   :  { %984 = vsyncadd [#allocation2], 4294967280 }
   0xb   :  { %11 = sfence }
   0xc   :  { %12 = vsyncpa [#allocation5], 0 }
   0xd   :  { %14 = vsyncpa [#allocation5 + $0x1], 0 }
   0xe   :  { %15 = vsyncpa [#allocation8], 0 }
   0xf   :  { %17 = vsyncpa [#allocation8 + $0x1], 0 }
  0x10   :  { %18 = vsyncpa [#allocation6], 0 }
  0x11   :  { %20 = vsyncpa [#allocation6 + $0x1], 0  ;;  %s1064_s22 = smov 0   ;;  %s1066_s23 = smov 0  }
  0x12   :  { %s1068_s24 = smov 0   ;;  %s1070_s25 = smov 0  }
  0x13   :  { %s1072_s26 = smov 0   ;;  %s1074_s0 = smov 0  }
  0x14 LB: > { %s695_s27 = sadd.s32 4294967295, %s1019_s0   ;;  %s696_s28 = sadd.s32 4294967294, %s1019_s0   ;;  %s1019_s0 = sphi %s1074_s0, %s26_s0   ;;  %s1015_s26 = sphi %s1072_s26, %s1735_s26   ;;  %s1011_s25 = sphi %s1070_s25, %s1734_s25   ;;  %s1007_s24 = sphi %s1068_s24, %s1733_s24   ;;  %s1003_s23 = sphi %s1066_s23, %s1732_s23   ;;  %s999_s22 = sphi %s1064_s22, %s1731_s22  }
  0x15   : > { %s38_s29 = sadd.s32 1, %s1015_s26  ;;  %s47_s30 = sadd.s32 1, %s1007_s24 }
  0x16   : > { %p40_p3 = scmp.ge.s32.totalorder %s38_s29, 2  ;;  %p54_p4 = scmp.ne.s32.totalorder %s1007_s24, %s1003_s23 }
  0x17   : > { %p55_p5 = scmp.eq.s32.totalorder %s1019_s0, 0  ;;  %p60_p6 = scmp.ne.s32.totalorder %s1003_s23, %s999_s22 }
  0x18   : > { %s1737_s29 = smov (%p40_p3, %s38_s29), 0  ;;  %p61_p8 = scmp.eq.s32.totalorder %s695_s27, 0 }
  0x19   : > { %p1105_p7 = por %p55_p5, %p54_p4  ;;  %s44_s5 = ssub.s32 %s1015_s26, %s1737_s29 }
  0x1a   : > { %p112_p9 = scmp.eq.s32.totalorder %s695_s27, 1  ;;  %p45_p10 = scmp.eq.s32.totalorder %s44_s5, 0 }
  0x1b   : > { %p1111_p11 = por %p61_p8, %p60_p6  ;;  %p118_p13 = scmp.eq.s32.totalorder %s696_s28, 1 }
  0x1c   : > { %p1115_p12 = por %p112_p9, %p54_p4  ;;  %p739_p2 = scmp.lt.s32.totalorder %s1019_s0, 2 }
  0x1d   : > { %s1684_s6 = scalar_select %p1111_p11, 1, 0 }
  0x1e   : > { %s1685_s7 = scalar_select %p1115_p12, 1, 0 }
  0x1f   : > { %s1120_s8 = scalar_select %p45_p10, %s1007_s24, %s47_s30  }
  0x20   : > { %p1122_p0 = por %p118_p13, %p60_p6  ;;  %s1129_s10 = sand.u32 1, %s1007_s24  }
  0x21   : > { %s699_s11 = sshll.u32 %s1129_s10, 7  ;;  %s718_s12 = sshll.u32 %s1015_s26, 11 }
  0x22   : > { %s1686_s9 = scalar_select %p1122_p0, 1, 0 }
  0x23   : > { %s1136_s15 = scalar_lea.hbm %s1678_s1, %s718_s12  ;;  %s142_s16 = scalar_lea.vmem [#allocation4], %s699_s11 }
  0x24   : > { %s151_s17 = sshll.u32 %s142_s16, 4  ;;  %p1142_p3 = pnand %p739_p2, %p1105_p7  ;;  %s1138_s17 = int_to_ptr.vmem [resolvable:$true] %s151_s17 }
  0x25   : > { %s139_s19 = scalar_lea.sflag [#allocation5], %s1129_s10  ;;  %s871_s20 = scalar_lea.hbm %s1136_s15, 2048 }
  0x26   : > { %p872_p5 = scmp.ne.s32.totalorder %s1136_s15, %s871_s20  ;;  %p873_p6 = pneg %p1142_p3 }
  0x27   : > { %s876_s28 = scalar_lea.hbm %s1678_s1, 4096  ;;  %p877_p7 = scmp.lt.u32.totalorder %s1136_s15, %s1678_s1 }
  0x28   : > { %p874_p8 = pnand %p873_p6, %p872_p5  ;;  %p878_p10 = scmp.lt.u32.totalorder %s876_s28, %s871_s20 }
  0x29   : > { %p880_p2 = scmp.lt.u32.totalorder %s871_s20, %s1136_s15 }
  0x2a   : > { %p875_p9 = pneg %p874_p8  ;;  %p879_p13 = por %p878_p10, %p877_p7 }
  0x2c   : > { %p881_p1 = por %p880_p2, %p879_p13 }
  0x2e   : > { %p882_p4 = pnand %p881_p1, %p875_p9 }
  0x30   : > { %885 = shalt.err (!%p882_p4)
}
  0x31   : > { %s886_s5 = scalar_lea.vmem %s1138_s17, 2048  ;;  %s1022_s11 = smov [#allocation4]  }
  0x32   : > { %p887_p5 = scmp.ne.s32.totalorder %s1138_s17, %s886_s5  ;;  %s891_s12 = sshll.u32 %s1022_s11, 4  ;;  %s892_s12 = int_to_ptr.vmem [resolvable:$false] %s891_s12 }
  0x33   : > { %s893_s13 = scalar_lea.vmem %s892_s12, 4096  ;;  %p894_p12 = scmp.lt.s32.totalorder %s1138_s17, %s892_s12 }
  0x34   : > { %p889_p8 = pnand %p887_p5, %p873_p6  ;;  %p895_p7 = scmp.lt.s32.totalorder %s893_s13, %s886_s5 }
  0x36   : > { %p890_p0 = pneg %p889_p8  ;;  %p896_p10 = por %p895_p7, %p894_p12 }
  0x38   : > { %p897_p13 = pnand %p896_p10, %p890_p0 }
  0x3a   : > { %900 = shalt.err (!%p897_p13)
}
  0x3b   : > { %s1023_s14 = smov 1024   ;;  %s1024_s16 = smov 64  }
  0x3c   : > { %731 = dma.hbm_to_vmem [thread:$0]  (!%p1142_p3), %s1136_s15, 2048, %s1138_s17, %s139_s19, %s1023_s14, %s1023_s14, %s1024_s16  }
  0x3d   : > { %p182_p1 = scmp.lt.s32.totalorder %s1019_s0, 3  ;;  %s703_s20 = sshll.u32 %s1129_s10, 6 }
  0x3e   : > { %s720_s21 = sshll.u32 %s1015_s26, 10  ;;  %p1688_p12 = scmp.ge.s32.totalorder %s1019_s0, 1 }
  0x3f   : > { %s1187_s4 = scalar_lea.hbm %s1679_s2, %s720_s21  ;;  %s165_s5 = scalar_lea.vmem [#allocation7], %s703_s20 }
  0x40   : > { %p1180_p0 = pnand %p1688_p12, %p182_p1  ;;  %s174_s11 = sshll.u32 %s165_s5, 4  ;;  %s1189_s11 = int_to_ptr.vmem [resolvable:$true] %s174_s11 }
  0x41   : > { %s162_s15 = scalar_lea.sflag [#allocation8], %s1129_s10  ;;  %s901_s17 = scalar_lea.hbm %s1187_s4, 1024 }
  0x42   : > { %p902_p4 = scmp.ne.s32.totalorder %s1187_s4, %s901_s17  ;;  %s906_s13 = scalar_lea.hbm %s1679_s2, 2048 }
  0x43   : > { %p907_p5 = scmp.lt.u32.totalorder %s1187_s4, %s1679_s2  ;;  %p908_p8 = scmp.lt.u32.totalorder %s906_s13, %s901_s17 }
  0x44   : > { %p904_p9 = pnand %p902_p4, %p873_p6  ;;  %p910_p10 = scmp.lt.u32.totalorder %s901_s17, %s1187_s4 }
  0x45   : > { %p909_p7 = por %p908_p8, %p907_p5 }
  0x46   : > { %p905_p2 = pneg %p904_p9 }
  0x47   : > { %p911_p13 = por %p910_p10, %p909_p7 }
  0x49   : > { %p912_p1 = pnand %p911_p13, %p905_p2 }
  0x4b   : > { %915 = shalt.err (!%p912_p1)
}
  0x4c   : > { %s916_s20 = scalar_lea.vmem %s1189_s11, 1024  ;;  %s1025_s21 = smov [#allocation7]  }
  0x4d   : > { %p917_p12 = scmp.ne.s32.totalorder %s1189_s11, %s916_s20  ;;  %s921_s28 = sshll.u32 %s1025_s21, 4  ;;  %s922_s28 = int_to_ptr.vmem [resolvable:$false] %s921_s28 }
  0x4e   : > { %s923_s30 = scalar_lea.vmem %s922_s28, 2048  ;;  %p924_p11 = scmp.lt.s32.totalorder %s1189_s11, %s922_s28 }
  0x4f   : > { %p919_p4 = pnand %p917_p12, %p873_p6  ;;  %p925_p5 = scmp.lt.s32.totalorder %s923_s30, %s916_s20 }
  0x51   : > { %p920_p9 = pneg %p919_p4  ;;  %p926_p8 = por %p925_p5, %p924_p11 }
  0x53   : > { %p927_p7 = pnand %p926_p8, %p920_p9 }
  0x55   : > { %930 = shalt.err (!%p927_p7)
}
  0x56   : > { %s1026_s5 = smov 512   ;;  %s1027_s17 = smov 32  }
  0x57   : > { %734 = dma.hbm_to_vmem [thread:$0]  (!%p1142_p3), %s1187_s4, 1024, %s1189_s11, %s162_s15, %s1026_s5, %s1026_s5, %s1027_s17  }
  0x58   : > { %186 = sbr.rel (%p1180_p0) target bundleno = 202 (0xca), region = 28  ;;  %s1220_s19 = sand.u32 (!%p1180_p0), 1, %s1003_s23  }
  0x59   : > { %s708_s12 = sshll.u32 (!%p1180_p0), %s1220_s19, 7  ;;  %s189_s13 = scalar_lea.sflag (!%p1180_p0), [#allocation5], %s1220_s19 }
  0x5a   : > { %s1224_s14 = scalar_lea.vmem (!%p1180_p0), [#allocation4], %s708_s12  ;;  %p1690_p11 = scmp.ne.s32.totalorder (!%p1180_p0), %s1684_s6, 0 }
  0x5f   : > { %986 = dma.done.wait (%p1690_p11), %s189_s13, 2048  }
  0x60   : > { %988 = vsyncadd (%p1690_p11), %s189_s13, 4294965248  ;;  %s709_s10 = sshll.u32 %s1220_s19, 6  ;;  %s198_s18 = scalar_lea.sflag [#allocation8], %s1220_s19 }
  0x61   : > { %s1232_s27 = scalar_lea.vmem [#allocation7], %s709_s10 }
  0x62   : > { %990 = dma.done.wait (%p1690_p11), %s198_s18, 1024  }
  0x63   : > { %992 = vsyncadd (%p1690_p11), %s198_s18, 4294966272  ;;  %s710_s4 = sshll.u32 %s1220_s19, 4  ;;  %v1028_v0 = vmov 0.0   ;;  %v1244_v1 = vld [vmem:[%s1224_s14] sm:$0xff]  ;;  %v1247_v2 = vld [vmem:[%s1224_s14 + $0x8] sm:$0xff]  ;;  %s1581_s6 = sld [smem:[#allocation3 + %s1011_s25]] }
  0x64   : > { %s1239_s11 = scalar_lea.vmem [#allocation9], %s710_s4  ;;  %v1250_v3 = vld [vmem:[%s1224_s14 + $0x10] sm:$0xff]  ;;  %v1253_v4 = vld [vmem:[%s1224_s14 + $0x18] sm:$0xff]  ;;  %v1256_v5 = vld [vmem:[%s1224_s14 + $0x20] sm:$0xff]  ;;  %v279_v9 = vmax.f32 %v1244_v1, 0.0  ;;  %v280_v13 = vmax.f32 %v1247_v2, 0.0 }
  0x65   : > { %236 = vst [vmem:[%s1239_s11] sm:$0xff] %v1028_v0  ;;  %237 = vst [vmem:[%s1239_s11 + $0x8] sm:$0xff] %v1028_v0  ;;  %v1259_v6 = vld [vmem:[%s1224_s14 + $0x28] sm:$0xff]  ;;  %v1262_v7 = vld [vmem:[%s1224_s14 + $0x30] sm:$0xff]  ;;  %v281_v14 = vmax.f32 %v1250_v3, 0.0  ;;  %v282_v15 = vmax.f32 %v1253_v4, 0.0  ;;  %v283_v19 = vmax.f32 %v1256_v5, 0.0 }
  0x66   : > { %v1265_v8 = vld [vmem:[%s1224_s14 + $0x38] sm:$0xff]  ;;  %v1269_v10 = vld [vmem:[%s1224_s14 + $0x40] sm:$0xff]  ;;  %v1272_v11 = vld [vmem:[%s1224_s14 + $0x48] sm:$0xff]  ;;  %v284_v20 = vmax.f32 %v1259_v6, 0.0  ;;  %v285_v21 = vmax.f32 %v1262_v7, 0.0  ;;  %s721_s20 = sshll.u32 %s1011_s25, 8 }
  0x67   : > { %v255_v12 = vld [vmem:[%s1232_s27] sm:$0xff]  ;;  %v1279_v16 = vld [vmem:[%s1224_s14 + $0x50] sm:$0xff]  ;;  %v256_v17 = vld [vmem:[%s1232_s27 + $0x8] sm:$0xff]  ;;  %v286_v23 = vmax.f32 %v1265_v8, 0.0  ;;  %v303_v24 = vand.u32 2147483647, %v1244_v1  ;;  %s1626_s5 = scalar_lea.hbm %s1680_s3, %s721_s20 }
  0x68   : > { %v257_v18 = vld [vmem:[%s1232_s27 + $0x10] sm:$0xff]  ;;  %v258_v22 = vld [vmem:[%s1232_s27 + $0x18] sm:$0xff]  ;;  %v1292_v27 = vld [vmem:[%s1232_s27 + $0x20] sm:$0xff]  ;;  %v263_v28 = vunpack.c.l.bf16 %v255_v12  ;;  %v264_v29 = vunpack.c.h.bf16 %v255_v12  ;;  %v304_v30 = vand.u32 2147483647, %v1247_v2  ;;  %v265_v32 = vunpack.c.l.bf16 %v256_v17  ;;  %s587_s21 = sshll.u32 %s1239_s11, 4  ;;  %s1628_s21 = int_to_ptr.vmem [resolvable:$true] %s587_s21 }
  0x69   : > { %v266_v33 = vunpack.c.h.bf16 %v256_v17  ;;  %v267_v34 = vunpack.c.l.bf16 %v257_v18  ;;  %v268_v35 = vunpack.c.h.bf16 %v257_v18  ;;  %v269_v36 = vunpack.c.l.bf16 %v258_v22  ;;  %v260_v40 = vld [vmem:[%s1232_s27 + $0x28] sm:$0xff]  ;;  %v1304_v45 = vld [vmem:[%s1232_s27 + $0x30] sm:$0xff]  ;;  %v1312_v12 = vld [vmem:[%s1232_s27 + $0x38] sm:$0xff]  ;;  %s711_s15 = sshll.u32 %s1581_s6, 3  ;;  %s574_s17 = scalar_lea.sflag [#allocation6], %s1220_s19 }
  0x6a   : > { %v305_v37 = vand.u32 2147483647, %v1250_v3  ;;  %v306_v38 = vand.u32 2147483647, %v1253_v4  ;;  %v307_v39 = vand.u32 2147483647, %v1256_v5  ;;  %v270_v41 = vunpack.c.h.bf16 %v258_v22  ;;  %s569_s16 = scalar_lea.vmem %s1239_s11, %s711_s15 [#allocation9] }
  0x6b   : > { %v271_v42 = vunpack.c.l.bf16 %v1292_v27  ;;  %v308_v43 = vand.u32 2147483647, %v1259_v6  ;;  %v309_v44 = vand.u32 2147483647, %v1262_v7  ;;  %v311_v46 = vsub.f32 0.0, %v303_v24  ;;  %s931_s12 = scalar_lea.vmem %s1628_s21, 256 }
  0x6c   : > { %v312_v47 = vsub.f32 0.0, %v304_v30  ;;  %v313_v48 = vsub.f32 0.0, %v305_v37  ;;  %v314_v49 = vsub.f32 0.0, %v306_v38  ;;  %v272_v50 = vunpack.c.h.bf16 %v1292_v27  ;;  %p932_p3 = scmp.ne.s32.totalorder %s1628_s21, %s931_s12  ;;  %p1728_p6 = scmp.ne.s32.totalorder %s1685_s7, 0 }
  0x6d   : > { %v310_v51 = vand.u32 2147483647, %v1265_v8  ;;  %v315_v52 = vsub.f32 0.0, %v307_v39  ;;  %v316_v53 = vsub.f32 0.0, %v308_v43  ;;  %v273_v54 = vunpack.c.l.bf16 %v260_v40  ;;  %s1029_s25 = smov [#allocation9]  }
  0x6e   : > { %v319_v55 = vmul.f32 1.442695, %v311_v46  ;;  %v321_v56 = vmul.f32 1.442695, %v312_v47  ;;  %v323_v57 = vmul.f32 1.442695, %v313_v48  ;;  %v274_v58 = vunpack.c.h.bf16 %v260_v40  ;;  %p933_p0 = pnand %p932_p3, %p1728_p6 }
  0x6f   : > { %v275_v59 = vunpack.c.l.bf16 %v1304_v45  ;;  %v317_v60 = vsub.f32 0.0, %v309_v44  ;;  %v325_v61 = vmul.f32 1.442695, %v314_v49  ;;  %v287_v62 = vmul.f32 %v263_v28, %v1244_v1  ;;  %s935_s13 = sshll.u32 %s1029_s25, 4  ;;  %s936_s13 = int_to_ptr.vmem [resolvable:$false] %s935_s13 }
  0x70   : > { %v288_v63 = vmul.f32 %v264_v29, %v1247_v2  ;;  %797 = vpow2.f32 %v319_v55  ;;  %v327_v0 = vmul.f32 1.442695, %v315_v52  ;;  %v289_v17 = vmul.f32 %v265_v32, %v1250_v3  ;;  %p934_p2 = pneg %p933_p0  ;;  %p938_p10 = scmp.lt.s32.totalorder %s1628_s21, %s936_s13 }
  0x71   : > { %v290_v18 = vmul.f32 %v266_v33, %v1253_v4  ;;  %v318_v22 = vsub.f32 0.0, %v310_v51  ;;  %799 = vpow2.f32 %v321_v56  ;;  %v291_v24 = vmul.f32 %v267_v34, %v1256_v5 }
  0x72   : > { %v292_v27 = vmul.f32 %v268_v35, %v1259_v6  ;;  %801 = vpow2.f32 %v323_v57  ;;  %v329_v30 = vmul.f32 1.442695, %v316_v53  ;;  %v293_v28 = vmul.f32 %v269_v36, %v1262_v7  ;;  %v1365_v6 = vld [vmem:[%s1224_s14 + $0x68] sm:$0xff] }
  0x73   : > { %v294_v29 = vmul.f32 %v270_v41, %v1265_v8  ;;  %803 = vpow2.f32 %v325_v61  ;;  %v331_v37 = vmul.f32 1.442695, %v317_v60  ;;  %v276_v38 = vunpack.c.h.bf16 %v1304_v45 }
  0x74   : > { %v277_v32 = vunpack.c.l.bf16 %v1312_v12  ;;  %805 = vpow2.f32 %v327_v0  ;;  %v1325_v34 = vsub.f32 %v279_v9, %v287_v62  ;;  %v1329_v35 = vsub.f32 %v280_v13, %v288_v63  ;;  %v1348_v9 = vld [vmem:[%s1224_s14 + $0x58] sm:$0xff]  ;;  %v1362_v13 = vld [vmem:[%s1224_s14 + $0x60] sm:$0xff] }
  0x75   : > { %v1333_v36 = vsub.f32 %v281_v14, %v289_v17  ;;  %v333_v39 = vmul.f32 1.442695, %v318_v22  ;;  %v1337_v40 = vsub.f32 %v282_v15, %v290_v18  ;;  %v1341_v1 = vsub.f32 %v283_v19, %v291_v24  ;;  %v1378_v19 = vld [vmem:[%s1224_s14 + $0x70] sm:$0xff] }
  0x76   : > { %v1345_v2 = vsub.f32 %v284_v20, %v292_v27  ;;  %807 = vpow2.f32 %v329_v30  ;;  %v1352_v3 = vsub.f32 %v285_v21, %v293_v28  ;;  %v1356_v4 = vsub.f32 %v286_v23, %v294_v29  ;;  %v1381_v20 = vld [vmem:[%s1224_s14 + $0x78] sm:$0xff]  ;;  %s937_s14 = scalar_lea.vmem %s936_s13, 512 }
  0x77   : > { %809 = vpow2.f32 %v331_v37  ;;  %v1359_v5 = vmul.f32 %v271_v42, %v1269_v10  ;;  %v1369_v15 = vmul.f32 %v272_v50, %v1272_v11  ;;  %v1372_v7 = vmul.f32 %v273_v54, %v1279_v16  ;;  %p939_p13 = scmp.lt.s32.totalorder %s937_s14, %s931_s12 }
  0x78   : > { %v1375_v8 = vmul.f32 %v274_v58, %v1348_v9  ;;  %811 = vpow2.f32 %v333_v39  ;;  %v447_v41 = vand.u32 2147483647, %v1269_v10  ;;  %v448_v45 = vand.u32 2147483647, %v1272_v11 }
  0x79   : > { %v449_v46 = vand.u32 2147483647, %v1279_v16  ;;  %v1391_v49 = vmul.f32 %v275_v59, %v1362_v13  ;;  %v450_v50 = vand.u32 2147483647, %v1348_v9  ;;  %v451_v51 = vand.u32 2147483647, %v1362_v13  ;;  %p940_p1 = por %p939_p13, %p938_p10 }
  0x7a   : > { %v798_v42 = vpop.eup %797  ;;  %v1396_v54 = vmul.f32 %v276_v38, %v1365_v6  ;;  %v452_v55 = vand.u32 2147483647, %v1365_v6  ;;  %v453_v56 = vand.u32 2147483647, %v1378_v19  ;;  %v454_v60 = vand.u32 2147483647, %v1381_v20 }
  0x7b   : > { %v800_v47 = vpop.eup %799  ;;  %v335_v48 = vadd.f32 1.0, %v798_v42  ;;  %v455_v59 = vsub.f32 0.0, %v447_v41  ;;  %v338_v62 = vmul.f32 -0.5, %v798_v42  ;;  %v456_v0 = vsub.f32 0.0, %v448_v45  ;;  %p941_p12 = pnand %p940_p1, %p934_p2 }
  0x7c   : > { %v802_v52 = vpop.eup %801  ;;  %v344_v53 = vadd.f32 1.0, %v800_v47  ;;  %v347_v63 = vmul.f32 -0.5, %v800_v47  ;;  %v457_v18 = vsub.f32 0.0, %v449_v46  ;;  %v458_v22 = vsub.f32 0.0, %v450_v50 }
  0x7d   : > { %v804_v57 = vpop.eup %803  ;;  %813 = vlog2.f32 %v335_v48  ;;  %v353_v58 = vadd.f32 1.0, %v802_v52  ;;  %v341_v27 = vand.u32 2147483647, %v798_v42  ;;  %v356_v30 = vmul.f32 -0.5, %v802_v52 }
  0x7e   : > { %v1401_v61 = vpop.eup %805  ;;  %815 = vlog2.f32 %v344_v53  ;;  %v362_v17 = vadd.f32 1.0, %v804_v57  ;;  %v459_v28 = vsub.f32 0.0, %v451_v51  ;;  %v460_v29 = vsub.f32 0.0, %v452_v55 }
  0x7f   : > { %817 = vlog2.f32 %v353_v58  ;;  %v350_v38 = vand.u32 2147483647, %v800_v47  ;;  %v365_v39 = vmul.f32 -0.5, %v804_v57  ;;  %v371_v41 = vadd.f32 1.0, %v1401_v61 }
  0x80   : > { %v1403_v24 = vpop.eup %807  ;;  %819 = vlog2.f32 %v362_v17  ;;  %v339_v48 = vadd.f32 1.0, %v338_v62  ;;  %v348_v53 = vadd.f32 1.0, %v347_v63  ;;  %v461_v45 = vsub.f32 0.0, %v453_v56 }
  0x81   : > { %v1405_v37 = vpop.eup %809  ;;  %v463_v58 = vmul.f32 1.442695, %v455_v59  ;;  %v359_v46 = vand.u32 2147483647, %v802_v52  ;;  %v368_v50 = vand.u32 2147483647, %v804_v57  ;;  %821 = vlog2.f32 %v371_v41 }
  0x82   : > { %v1408_v44 = vpop.eup %811  ;;  %v380_v43 = vadd.f32 1.0, %v1403_v24  ;;  %v357_v51 = vadd.f32 1.0, %v356_v30  ;;  %v374_v55 = vmul.f32 -0.5, %v1401_v61  ;;  %v389_v23 = vadd.f32 1.0, %v1405_v37 }
  0x83   : > { %v465_v17 = vmul.f32 1.442695, %v456_v0  ;;  %vm1413_vm0 = vcmp.lt.f32.partialorder %v341_v27, 0.0004427343  ;;  %vm1417_vm1 = vcmp.lt.f32.partialorder %v350_v38, 0.0004427343  ;;  %v340_v63 = vmul.f32 %v798_v42, %v339_v48 }
  0x84   : > { %v366_v59 = vadd.f32 1.0, %v365_v39  ;;  %v462_v62 = vsub.f32 0.0, %v454_v60  ;;  %v349_v41 = vmul.f32 %v800_v47, %v348_v53  ;;  %823 = vlog2.f32 %v380_v43 }
  0x85   : > { %v398_v30 = vadd.f32 1.0, %v1408_v44  ;;  %vm1422_vm2 = vcmp.lt.f32.partialorder %v359_v46, 0.0004427343  ;;  %vm1426_vm3 = vcmp.lt.f32.partialorder %v368_v50, 0.0004427343  ;;  %825 = vlog2.f32 %v389_v23 }
  0x86   : > { %v377_v27 = vand.u32 2147483647, %v1401_v61  ;;  %v358_v60 = vmul.f32 %v802_v52, %v357_v51  ;;  %v375_v42 = vadd.f32 1.0, %v374_v55  ;;  %v467_v47 = vmul.f32 1.442695, %v457_v18 }
  0x87   : > { %v814_v14 = vpop.eup %813  ;;  %v367_v53 = vmul.f32 %v804_v57, %v366_v59  ;;  %v383_v46 = vmul.f32 -0.5, %v1403_v24  ;;  %827 = vlog2.f32 %v398_v30  ;;  %v469_v25 = vmul.f32 1.442695, %v458_v22 }
  0x88   : > { %v816_v38 = vpop.eup %815  ;;  %v337_v39 = vmul.f32 0.6931472, %v814_v14  ;;  %829 = vpow2.f32 %v463_v58  ;;  %v392_v14 = vmul.f32 -0.5, %v1405_v37  ;;  %vm1441_vm4 = vcmp.lt.f32.partialorder %v377_v27, 0.0004427343 }
  0x89   : > { %v818_v43 = vpop.eup %817  ;;  %v346_v48 = vmul.f32 0.6931472, %v816_v38  ;;  %831 = vpow2.f32 %v465_v17  ;;  %v471_v22 = vmul.f32 1.442695, %v459_v28  ;;  %v473_v55 = vmul.f32 1.442695, %v460_v29 }
  0x8a   : > { %v343_v50 = vsel %vm1413_vm0, %v340_v63, %v337_v39  ;;  %v355_v26 = vmul.f32 0.6931472, %v818_v43  ;;  %v820_v33 = vpop.eup %819  ;;  %833 = vpow2.f32 %v467_v47  ;;  %v376_v56 = vmul.f32 %v1401_v61, %v375_v42 }
  0x8b   : > { %v352_v23 = vsel %vm1417_vm1, %v349_v41, %v346_v48  ;;  %v407_v52 = vadd.f32 %v343_v50, %v1325_v34  ;;  %v364_v18 = vmul.f32 0.6931472, %v820_v33  ;;  %v822_v21 = vpop.eup %821  ;;  %835 = vpow2.f32 %v469_v25 }
  0x8c   : > { %v361_v57 = vsel %vm1422_vm2, %v358_v60, %v355_v26  ;;  %v408_v51 = vadd.f32 %v352_v23, %v1329_v35  ;;  %v475_v59 = vmul.f32 1.442695, %v461_v45  ;;  %v373_v31 = vmul.f32 0.6931472, %v822_v21 }
  0x8d   : > { %v409_v34 = vadd.f32 %v361_v57, %v1333_v36  ;;  %v370_v26 = vsel %vm1426_vm3, %v367_v53, %v364_v18  ;;  %v384_v33 = vadd.f32 1.0, %v383_v46  ;;  %837 = vpow2.f32 %v471_v22 }
  0x8e   : > { %v415_v17 = vadd.f32 %v408_v51, %v407_v52  ;;  %v824_v35 = vpop.eup %823  ;;  %v386_v63 = vand.u32 2147483647, %v1403_v24  ;;  %v393_v41 = vadd.f32 1.0, %v392_v14  ;;  %839 = vpow2.f32 %v473_v55 }
  0x8f   : > { %v477_v25 = vmul.f32 1.442695, %v462_v62  ;;  %v826_v28 = vpop.eup %825  ;;  %v395_v29 = vand.u32 2147483647, %v1405_v37  ;;  %v401_v61 = vmul.f32 -0.5, %v1408_v44  ;;  %v1455_v36 = vmul.f32 %v277_v32, %v1378_v19 }
  0x90   : > { %v1701_v45 = vunpack.c.h.bf16 %v1312_v12  ;;  %v410_v0 = vadd.f32 %v370_v26, %v1337_v40  ;;  %v416_v27 = vadd.f32 %v415_v17, %v409_v34  ;;  %v1702_v62 = vmax.f32 %v1269_v10, 0.0 }
  0x91   : > { %841 = vpow2.f32 %v475_v59  ;;  %v828_v39 = vpop.eup %827  ;;  %v379_v60 = vsel %vm1441_vm4, %v376_v56, %v373_v31  ;;  %v382_v32 = vmul.f32 0.6931472, %v824_v35  ;;  %v385_v42 = vmul.f32 %v1403_v24, %v384_v33 }
  0x92   : > { %v1460_v30 = vmul.f32 %v1701_v45, %v1381_v20  ;;  %v1466_v38 = vsub.f32 %v1702_v62, %v1359_v5  ;;  %v1703_v12 = vmax.f32 %v1272_v11, 0.0  ;;  %v830_v40 = vpop.eup %829  ;;  %vm1476_vm5 = vcmp.lt.f32.partialorder %v386_v63, 0.0004427343 }
  0x93   : > { %v391_v10 = vmul.f32 0.6931472, %v826_v28  ;;  %v394_v5 = vmul.f32 %v1405_v37, %v393_v41  ;;  %843 = vpow2.f32 %v477_v25  ;;  %v832_v48 = vpop.eup %831  ;;  %vm1481_vm6 = vcmp.lt.f32.partialorder %v395_v29, 0.0004427343 }
  0x94   : > { %v1474_v47 = vsub.f32 %v1703_v12, %v1369_v15  ;;  %v402_v24 = vadd.f32 1.0, %v401_v61  ;;  %v404_v46 = vand.u32 2147483647, %v1408_v44  ;;  %v479_v11 = vadd.f32 1.0, %v830_v40  ;;  %v834_v15 = vpop.eup %833 }
  0x95   : > { %v411_v50 = vadd.f32 %v379_v60, %v1341_v1  ;;  %v417_v23 = vadd.f32 %v416_v27, %v410_v0  ;;  %v1708_v14 = vmax.f32 %v1279_v16, 0.0  ;;  %v488_v37 = vadd.f32 1.0, %v832_v48  ;;  %v1492_v57 = vpop.eup %835 }
  0x96   : > { %v388_v18 = vsel %vm1476_vm5, %v385_v42, %v382_v32  ;;  %v1709_v51 = vmax.f32 %v1348_v9, 0.0  ;;  %v1710_v1 = vmax.f32 %v1362_v13, 0.0  ;;  %845 = vlog2.f32 %v479_v11 }
  0x97   : > { %v1490_v52 = vsub.f32 %v1708_v14, %v1372_v7  ;;  %v397_v16 = vsel %vm1481_vm6, %v394_v5, %v391_v10  ;;  %v482_v7 = vmul.f32 -0.5, %v830_v40  ;;  %847 = vlog2.f32 %v488_v37  ;;  %v1508_v55 = vpop.eup %837 }
  0x98   : > { %v1499_v21 = vsub.f32 %v1709_v51, %v1375_v8  ;;  %v1504_v58 = vsub.f32 %v1710_v1, %v1391_v49  ;;  %v497_v22 = vadd.f32 1.0, %v834_v15  ;;  %v1510_v56 = vmul.f32 0.6931472, %v828_v39  ;;  %v1519_v49 = vpop.eup %839 }
  0x99   : > { %v1513_v9 = vmul.f32 %v1408_v44, %v402_v24  ;;  %vm1515_vm7 = vcmp.lt.f32.partialorder %v404_v46, 0.0004427343  ;;  %v491_v13 = vmul.f32 -0.5, %v832_v48  ;;  %v412_v34 = vadd.f32 %v388_v18, %v1345_v2 }
  0x9a   : > { %v418_v17 = vadd.f32 %v417_v23, %v411_v50  ;;  %849 = vlog2.f32 %v497_v22  ;;  %v506_v59 = vadd.f32 1.0, %v1492_v57  ;;  %v1524_v26 = vadd.f32 %v397_v16, %v1352_v3 }
  0x9b   : > { %v1713_v44 = vmax.f32 %v1365_v6, 0.0  ;;  %v485_v33 = vand.u32 2147483647, %v830_v40  ;;  %v500_v35 = vmul.f32 -0.5, %v834_v15  ;;  %v1531_v63 = vpop.eup %841  ;;  %v483_v41 = vadd.f32 1.0, %v482_v7 }
  0x9c   : > { %v494_v25 = vand.u32 2147483647, %v832_v48  ;;  %851 = vlog2.f32 %v506_v59  ;;  %v515_v2 = vadd.f32 1.0, %v1508_v55  ;;  %v406_v3 = vsel %vm1515_vm7, %v1513_v9, %v1510_v56 }
  0x9d   : > { %v1529_v31 = vsub.f32 %v1713_v44, %v1396_v54  ;;  %v492_v28 = vadd.f32 1.0, %v491_v13  ;;  %v509_v29 = vmul.f32 -0.5, %v1492_v57  ;;  %v524_v6 = vadd.f32 1.0, %v1519_v49  ;;  %v1540_v54 = vpop.eup %843 }
  0x9e   : > { %v1542_v61 = vadd.f32 %v418_v17, %v412_v34  ;;  %v503_v45 = vand.u32 2147483647, %v834_v15  ;;  %853 = vlog2.f32 %v515_v2  ;;  %v518_v0 = vmul.f32 -0.5, %v1508_v55 }
  0x9f   : > { %vm1545_vm8 = vcmp.lt.f32.partialorder %v485_v33, 0.0004427343  ;;  %v501_v62 = vadd.f32 1.0, %v500_v35  ;;  %855 = vlog2.f32 %v524_v6  ;;  %v533_v39 = vadd.f32 1.0, %v1531_v63 }
  0xa0   : > { %v484_v60 = vmul.f32 %v830_v40, %v483_v41  ;;  %vm1550_vm9 = vcmp.lt.f32.partialorder %v494_v25, 0.0004427343  ;;  %v512_v42 = vand.u32 2147483647, %v1492_v57  ;;  %v527_v12 = vmul.f32 -0.5, %v1519_v49  ;;  %v846_v43 = vpop.eup %845 }
  0xa1   : > { %v493_v10 = vmul.f32 %v832_v48, %v492_v28  ;;  %v510_v5 = vadd.f32 1.0, %v509_v29  ;;  %857 = vlog2.f32 %v533_v39  ;;  %v542_v53 = vadd.f32 1.0, %v1540_v54  ;;  %v848_v24 = vpop.eup %847 }
  0xa2   : > { %v481_v46 = vmul.f32 0.6931472, %v846_v43  ;;  %vm1557_vm10 = vcmp.lt.f32.partialorder %v503_v45, 0.0004427343  ;;  %v519_v40 = vadd.f32 1.0, %v518_v0  ;;  %v536_v50 = vmul.f32 -0.5, %v1531_v63 }
  0xa3   : > { %v490_v23 = vmul.f32 0.6931472, %v848_v24  ;;  %v502_v14 = vmul.f32 %v834_v15, %v501_v62  ;;  %859 = vlog2.f32 %v542_v53  ;;  %v545_v37 = vmul.f32 -0.5, %v1540_v54 }
  0xa4   : > { %v850_v18 = vpop.eup %849  ;;  %v487_v48 = vsel %vm1545_vm8, %v484_v60, %v481_v46  ;;  %vm1565_vm11 = vcmp.lt.f32.partialorder %v512_v42, 0.0004427343  ;;  %v521_v1 = vand.u32 2147483647, %v1508_v55  ;;  %v528_v16 = vadd.f32 1.0, %v527_v12 }
  0xa5   : > { %v496_v7 = vsel %vm1550_vm9, %v493_v10, %v490_v23  ;;  %v499_v22 = vmul.f32 0.6931472, %v850_v18  ;;  %v511_v15 = vmul.f32 %v1492_v57, %v510_v5  ;;  %v530_v13 = vand.u32 2147483647, %v1519_v49 }
  0xa6   : > { %v852_v34 = vpop.eup %851  ;;  %v520_v17 = vmul.f32 %v1508_v55, %v519_v40  ;;  %v537_v59 = vadd.f32 1.0, %v536_v50  ;;  %v551_v44 = vadd.f32 %v487_v48, %v1466_v38  ;;  %v552_v33 = vadd.f32 %v496_v7, %v1474_v47 }
  0xa7   : > { %v505_v35 = vsel %vm1557_vm10, %v502_v14, %v499_v22  ;;  %v508_v41 = vmul.f32 0.6931472, %v852_v34  ;;  %v539_v25 = vand.u32 2147483647, %v1531_v63  ;;  %v546_v2 = vadd.f32 1.0, %v545_v37 }
  0xa8   : > { %v854_v57 = vpop.eup %853  ;;  %vm1583_vm12 = vcmp.lt.f32.partialorder %v521_v1, 0.0004427343  ;;  %v529_v55 = vmul.f32 %v1519_v49, %v528_v16  ;;  %v553_v38 = vadd.f32 %v505_v35, %v1490_v52  ;;  %v559_v29 = vadd.f32 %v552_v33, %v551_v44 }
  0xa9   : > { %v856_v47 = vpop.eup %855  ;;  %v514_v6 = vsel %vm1565_vm11, %v511_v15, %v508_v41  ;;  %v517_v45 = vmul.f32 0.6931472, %v854_v57  ;;  %vm1591_vm13 = vcmp.lt.f32.partialorder %v530_v13, 0.0004427343  ;;  %v548_v27 = vand.u32 2147483647, %v1540_v54 }
  0xaa   : > { %v526_v62 = vmul.f32 0.6931472, %v856_v47  ;;  %v538_v39 = vmul.f32 %v1531_v63, %v537_v59  ;;  %v554_v60 = vadd.f32 %v514_v6, %v1499_v21  ;;  %v560_v49 = vadd.f32 %v559_v29, %v553_v38 }
  0xab   : > { %v858_v32 = vpop.eup %857  ;;  %v1726_v52 = vmax.f32 %v1378_v19, 0.0  ;;  %v523_v12 = vsel %vm1583_vm12, %v520_v17, %v517_v45  ;;  %vm540_vm14 = vcmp.lt.f32.partialorder %v539_v25, 0.0004427343  ;;  %v547_v43 = vmul.f32 %v1540_v54, %v546_v2 }
  0xac   : > { %v532_v10 = vsel %vm1591_vm13, %v529_v55, %v526_v62  ;;  %v535_v5 = vmul.f32 0.6931472, %v858_v32  ;;  %v555_v63 = vadd.f32 %v523_v12, %v1504_v58  ;;  %v561_v21 = vadd.f32 %v560_v49, %v554_v60 }
  0xad   : > { %v445_v42 = vsub.f32 %v1726_v52, %v1455_v36  ;;  %v860_v53 = vpop.eup %859  ;;  %v414_v19 = vadd.f32 %v406_v3, %v1356_v4  ;;  %v1727_v36 = vmax.f32 %v1381_v20, 0.0  ;;  %vm549_vm15 = vcmp.lt.f32.partialorder %v548_v27, 0.0004427343 }
  0xae   : > { %v556_v24 = vadd.f32 %v532_v10, %v1529_v31  ;;  %v420_v58 = vadd.f32 %v1542_v61, %v1524_v26  ;;  %v541_v46 = vsel %vm540_vm14, %v538_v39, %v535_v5  ;;  %v544_v11 = vmul.f32 0.6931472, %v860_v53  ;;  %v570_v31 = vld [vmem:[%s569_s16] sm:$0xff] }
  0xaf   : > { %v446_v54 = vsub.f32 %v1727_v36, %v1460_v30  ;;  %v562_v8 = vadd.f32 %v561_v21, %v555_v63  ;;  %v557_v40 = vadd.f32 %v541_v46, %v445_v42 }
  0xb0   : > { %v550_v56 = vsel %vm549_vm15, %v547_v43, %v544_v11  ;;  %v421_v20 = vadd.f32 %v420_v58, %v414_v19 }
  0xb1   : > { %v563_v4 = vadd.f32 %v562_v8, %v556_v24  ;;  %v558_v9 = vadd.f32 %v550_v56, %v446_v54 }
  0xb3   : > { %v564_v30 = vadd.f32 %v563_v4, %v557_v40 }
  0xb5   : > { %v565_v3 = vadd.f32 %v564_v30, %v558_v9 }
  0xb7   : > { %v566_v50 = vadd.f32 %v565_v3, %v421_v20 }
  0xb9   : > { %v571_v26 = vadd.f32 %v570_v31, %v566_v50 }
  0xbb   : > { %572 = vst [vmem:[%s569_s16] sm:$0xff] %v571_v26 }
  0xbc   : > { %944 = shalt.err (!%p941_p12)
}
  0xbd   : > { %s945_s10 = scalar_lea.hbm %s1626_s5, 256  ;;  %s949_s4 = scalar_lea.hbm %s1680_s3, 512 }
  0xbe   : > { %p946_p4 = scmp.ne.s32.totalorder %s1626_s5, %s945_s10  ;;  %p950_p8 = scmp.lt.u32.totalorder %s1626_s5, %s1680_s3 }
  0xbf   : > { %p951_p7 = scmp.lt.u32.totalorder %s949_s4, %s945_s10  ;;  %p953_p3 = scmp.lt.u32.totalorder %s945_s10, %s1626_s5 }
  0xc0   : > { %p947_p9 = pnand %p946_p4, %p1728_p6 }
  0xc1   : > { %p952_p11 = por %p951_p7, %p950_p8 }
  0xc2   : > { %p948_p5 = pneg %p947_p9 }
  0xc3   : > { %p954_p0 = por %p953_p3, %p952_p11 }
  0xc5   : > { %p955_p2 = pnand %p954_p0, %p948_p5 }
  0xc7   : > { %958 = shalt.err (!%p955_p2)
}
  0xc8   : > { %s1030_s15 = smov 128   ;;  %s1031_s16 = smov 8  }
  0xc9   : > { %726 = dma.vmem_to_hbm [thread:$0]  (%p1728_p6), %s1628_s21, 256, %s1626_s5, %s574_s17, %s1030_s15, %s1030_s15, %s1031_s16  }
  0xca PF: > { %s602_s20 = sand.u32 1, %s999_s22   ;;  %p1729_p10 = scmp.ne.s32.totalorder %s1686_s9, 0 }
  0xcb   : > { %p1730_p13 = scmp.ge.s32.totalorder %s1019_s0, 2  ;;  %s603_s28 = scalar_lea.sflag [#allocation6], %s602_s20 }
  0xcd   : > { %p736_p1 = pnand %p1730_p13, %p1729_p10 }
  0xcf   : > { %994 = dma.done.wait (!%p736_p1), %s603_s28, 256  }
  0xd0   : > { %996 = vsyncadd (!%p736_p1), %s603_s28, 4294967040  ;;  %s26_s0 = sadd.s32 1, %s1019_s0   ;;  %s1731_s22 = smov %s1003_s23 }
  0xd1   : > { %p23_p12 = scmp.ge.s32.totalorder %s26_s0, 4   ;;  %s1732_s23 = smov %s1007_s24 }
  0xd2   : > { %s1733_s24 = smov %s1120_s8  ;;  %s1734_s25 = smov %s1015_s26 }
  0xd3   : > { %s1735_s26 = smov %s1737_s29  ;;  %25 = sbr.rel (!%p23_p12) target bundleno = 20 (0x14), region = 91 }
  0xda   :  { %608 = vsyncpa [#allocation5], 1 }
  0xdb   :  { %610 = vsyncpa [#allocation5 + $0x1], 1 }
  0xdc   :  { %611 = vsyncpa [#allocation8], 1 }
  0xdd   :  { %613 = vsyncpa [#allocation8 + $0x1], 1 }
  0xde   :  { %614 = vsyncpa [#allocation6], 1 }
  0xdf   :  { %616 = vsyncpa [#allocation6 + $0x1], 1 }

</bundles_post_ra>
